<compile_context>
chip_gen: v6e
topology: v6e:2x2x1
jax: 0.10.0
libtpu: 0.0.40
codegen_flags: <defaults>
</compile_context>

<pallas_src>
import functools

import jax
import jax.numpy as jnp
from jax.experimental import pallas as pl
from jax.experimental.pallas import tpu as pltpu


# --------------------------------------------------------------------------- #
# Kernel
# --------------------------------------------------------------------------- #
def mlp_kernel(x_ref, w1_ref, b1_ref, w2_ref, b2_ref, w3_ref, o_ref, *, act_dtype):
    mm_dtype = w1_ref.dtype                     # bf16 matmul inputs (MXU)
    x = x_ref[...].astype(mm_dtype)             # in-kernel cast, hidden by pipeline

    # linear1 + tanh (f32 MXU accumulation, bias/tanh in act_dtype)
    h1 = jnp.tanh(
        jnp.dot(x, w1_ref[...], preferred_element_type=jnp.float32).astype(act_dtype)
        + b1_ref[...]
    )
    # linear2 + tanh
    h2 = jnp.tanh(
        jnp.dot(h1.astype(mm_dtype), w2_ref[...],
                preferred_element_type=jnp.float32).astype(act_dtype)
        + b2_ref[...]
    )
    # linear3 (no bias); write the exact (tile_b, out_sz) block
    o_ref[...] = jnp.dot(
        h2.astype(mm_dtype), w3_ref[...], preferred_element_type=jnp.float32
    ).astype(o_ref.dtype)


# --------------------------------------------------------------------------- #
# Generation-aware configuration helpers
# --------------------------------------------------------------------------- #
def _tpu_kind():
    try:
        return jax.devices()[0].device_kind.lower()
    except Exception:
        return ""


def _tensorcores_per_chip():
    # v7x exposes 2 TensorCores per chip; v5e/v6e are single-TC.
    return 2 if "v7" in _tpu_kind() else 1


def _default_act_dtype():
    # bf16 VPU/EUP exist on v6e/v7x; v5e has no bf16 datapath -> keep f32 there.
    kind = _tpu_kind()
    return jnp.bfloat16 if ("v6" in kind or "v7" in kind) else jnp.float32


def prepare_params(w1, b1, w2, b2, w3, *, mm_dtype=jnp.bfloat16,
                   act_dtype=jnp.float32):
    """One-time parameter prep (dtype casts hoisted out of the forward path).

    w*: [in, out] (pre-transposed vs PyTorch's [out, in]); b*: [1, out].
    """
    return dict(
        w1=w1.astype(mm_dtype), b1=b1.astype(act_dtype),
        w2=w2.astype(mm_dtype), b2=b2.astype(act_dtype),
        w3=w3.astype(mm_dtype),
    )


# --------------------------------------------------------------------------- #
# Forward
# --------------------------------------------------------------------------- #
def differentiable_model_forward(x, params, *, tile_b=None):
    """x: f32 [B, in]; params from prepare_params. Returns f32 [B, out]."""
    w1, b1 = params["w1"], params["b1"]
    w2, b2 = params["w2"], params["b2"]
    w3 = params["w3"]

    B_orig, in_sz = x.shape
    hid = w1.shape[1]
    out_sz = w3.shape[1]
    act_dtype = b1.dtype

    # Keep the batch a multiple of 8 sublanes (static no-op for aligned batches).
    B = B_orig
    if B % 8:
        pad = (-B) % 8
        x = jnp.pad(x, ((0, pad), (0, 0)))
        B = B + pad

    # One grid step on single-TC chips; one tile per TensorCore on v7x.
    if tile_b is None:
        n_tc = _tensorcores_per_chip()
        tile_b = B if n_tc == 1 else pl.cdiv(B, n_tc)
    tile_b = int(min(tile_b, B))
    tile_b = max(8, ((tile_b + 7) // 8) * 8)
    grid = (pl.cdiv(B, tile_b),)

    # Constant-index (resident) operands: single-buffered, no wasted VMEM copy.
    resident = dict(pipeline_mode=pl.Buffered(buffer_count=1))

    out = pl.pallas_call(
        functools.partial(mlp_kernel, act_dtype=act_dtype),
        out_shape=jax.ShapeDtypeStruct((B, out_sz), jnp.float32),
        grid_spec=pltpu.PrefetchScalarGridSpec(
            num_scalar_prefetch=0,
            grid=grid,
            in_specs=[
                pl.BlockSpec((tile_b, in_sz), lambda i: (i, 0)),
                pl.BlockSpec((in_sz, hid), lambda i: (0, 0), **resident),
                pl.BlockSpec((1, hid), lambda i: (0, 0), **resident),
                pl.BlockSpec((hid, hid), lambda i: (0, 0), **resident),
                pl.BlockSpec((1, hid), lambda i: (0, 0), **resident),
                pl.BlockSpec((hid, out_sz), lambda i: (0, 0), **resident),
            ],
            out_specs=pl.BlockSpec((tile_b, out_sz), lambda i: (i, 0)),
        ),
        compiler_params=pltpu.CompilerParams(
            dimension_semantics=("parallel",),
        ),
    )(x, w1, b1, w2, b2, w3)

    return out if B == B_orig else out[:B_orig]


# --------------------------------------------------------------------------- #
# Init helpers (match nn.init.orthogonal_ / nn.Linear bias init semantics)
# --------------------------------------------------------------------------- #
def orthogonal_init(key, out_features, in_features, dtype=jnp.float32):
    rows, cols = out_features, in_features
    flat = jax.random.normal(key, (max(rows, cols), min(rows, cols)), jnp.float32)
    q, r = jnp.linalg.qr(flat)
    q = q * jnp.sign(jnp.diag(r))[None, :]
    if rows < cols:
        q = q.T
    return q[:rows, :cols].astype(dtype)


def uniform_bias_init(key, out_features, fan_in, dtype=jnp.float32):
    bound = 1.0 / jnp.sqrt(jnp.asarray(fan_in, jnp.float32))
    return jax.random.uniform(key, (1, out_features), dtype, -bound, bound)


# --------------------------------------------------------------------------- #
# References
# --------------------------------------------------------------------------- #
def reference_forward(x, w1, b1, w2, b2, w3, mm_dtype=jnp.bfloat16,
                      act_dtype=jnp.float32):
    """Pure-JAX reference with the same bf16-matmul / act_dtype recipe."""
    h1 = jnp.tanh(jnp.dot(x.astype(mm_dtype), w1.astype(mm_dtype),
                          preferred_element_type=jnp.float32).astype(act_dtype)
                  + b1.astype(act_dtype))
    h2 = jnp.tanh(jnp.dot(h1.astype(mm_dtype), w2.astype(mm_dtype),
                          preferred_element_type=jnp.float32).astype(act_dtype)
                  + b2.astype(act_dtype))
    return jnp.dot(h2.astype(mm_dtype), w3.astype(mm_dtype),
                   preferred_element_type=jnp.float32)


def reference_forward_f32(x, w1, b1, w2, b2, w3):
    h1 = jnp.tanh(x @ w1 + b1)
    h2 = jnp.tanh(h1 @ w2 + b2)
    return h2 @ w3


# --------------------------------------------------------------------------- #
# Demo / self-test
# --------------------------------------------------------------------------- #
if __name__ == "__main__":
    batch = 512
    input_size = 16
    hidden_size = 32
    output_size = 8

    key = jax.random.PRNGKey(0)
    kx, k1, k2, k3, kb1, kb2 = jax.random.split(key, 6)

    x = jax.random.normal(kx, (batch, input_size), jnp.float32)

    # PyTorch weight shape is [out, in]; store transposed so the kernel does x @ W.
    w1 = orthogonal_init(k1, hidden_size, input_size).T      # [in, hidden]
    w2 = orthogonal_init(k2, hidden_size, hidden_size).T     # [hidden, hidden]
    w3 = orthogonal_init(k3, output_size, hidden_size).T     # [hidden, out]
    b1 = uniform_bias_init(kb1, hidden_size, input_size)     # [1, hidden]
    b2 = uniform_bias_init(kb2, hidden_size, hidden_size)    # [1, hidden]

    act_dtype = _default_act_dtype()
    params = prepare_params(w1, b1, w2, b2, w3, act_dtype=act_dtype)

    n_tc = _tensorcores_per_chip()
    tile_b = batch if n_tc == 1 else max(8, ((pl.cdiv(batch, n_tc) + 7) // 8) * 8)

    forward = jax.jit(functools.partial(differentiable_model_forward, tile_b=tile_b))
    out = jax.block_until_ready(forward(x, params))
    assert out.shape == (batch, output_size)

    # Match the same-recipe reference tightly...
    ref = reference_forward(x, w1, b1, w2, b2, w3, act_dtype=act_dtype)
    tol = 1e-3 if act_dtype == jnp.float32 else 5e-2
    assert jnp.allclose(out, ref, atol=tol, rtol=tol)
    # ...and the full-f32 PyTorch-equivalent reference within bf16 rounding.
    ref_f32 = reference_forward_f32(x, w1, b1, w2, b2, w3)
    assert jnp.allclose(out, ref_f32, atol=1e-1, rtol=1e-1)

    print("KERNEL_OK")
</pallas_src>

<mosaic_0001>
module attributes {stable_mosaic.version = 11 : i64} {
  func.func @mlp_kernel(%arg0: i32, %arg1: memref<512x16xf32, #tpu.memory_space<vmem>>, %arg2: memref<16x32xbf16, #tpu.memory_space<vmem>>, %arg3: memref<1x32xf32, #tpu.memory_space<vmem>>, %arg4: memref<32x32xbf16, #tpu.memory_space<vmem>>, %arg5: memref<1x32xf32, #tpu.memory_space<vmem>>, %arg6: memref<32x8xbf16, #tpu.memory_space<vmem>>, %arg7: memref<512x8xf32, #tpu.memory_space<vmem>>) attributes {dimension_semantics = [#tpu.dimension_semantics<parallel>], iteration_bounds = array<i64: 1>, scalar_prefetch = 0 : i64, scratch_operands = 0 : i64, tpu.core_type = #tpu.core_type<tc>, window_params = [{transform_indices = @transform_0, window_bounds = array<i64: 512, 16>}, {pipeline_mode = #tpu.pipeline_mode<synchronous>, transform_indices = @transform_1, window_bounds = array<i64: 16, 32>}, {pipeline_mode = #tpu.pipeline_mode<synchronous>, transform_indices = @transform_2, window_bounds = array<i64: 1, 32>}, {pipeline_mode = #tpu.pipeline_mode<synchronous>, transform_indices = @transform_3, window_bounds = array<i64: 32, 32>}, {pipeline_mode = #tpu.pipeline_mode<synchronous>, transform_indices = @transform_4, window_bounds = array<i64: 1, 32>}, {pipeline_mode = #tpu.pipeline_mode<synchronous>, transform_indices = @transform_5, window_bounds = array<i64: 32, 8>}, {transform_indices = @transform_6, window_bounds = array<i64: 512, 8>}]} {
    %c0 = arith.constant 0 : index
    %c0_0 = arith.constant 0 : index
    %0 = vector.load %arg1[%c0, %c0_0] : memref<512x16xf32, #tpu.memory_space<vmem>>, vector<512x16xf32>
    %1 = arith.truncf %0 : vector<512x16xf32> to vector<512x16xbf16>
    %c0_1 = arith.constant 0 : index
    %c0_2 = arith.constant 0 : index
    %2 = vector.load %arg2[%c0_1, %c0_2] : memref<16x32xbf16, #tpu.memory_space<vmem>>, vector<16x32xbf16>
    %cst = arith.constant dense<0.000000e+00> : vector<512x32xf32>
    %3 = tpu.matmul %1, %2, %cst {dimension_numbers = #tpu.dot_dimension_numbers<[1], [0], [0], [1], [0, 0, 1, 1], [], []>} : vector<512x16xbf16>, vector<16x32xbf16>, vector<512x32xf32> -> vector<512x32xf32>
    %c0_3 = arith.constant 0 : index
    %c0_4 = arith.constant 0 : index
    %4 = vector.load %arg3[%c0_3, %c0_4] : memref<1x32xf32, #tpu.memory_space<vmem>>, vector<1x32xf32>
    %5 = vector.broadcast %4 : vector<1x32xf32> to vector<512x32xf32>
    %6 = arith.addf %3, %5 : vector<512x32xf32>
    %7 = math.tanh %6 : vector<512x32xf32>
    %8 = arith.truncf %7 : vector<512x32xf32> to vector<512x32xbf16>
    %c0_5 = arith.constant 0 : index
    %c0_6 = arith.constant 0 : index
    %9 = vector.load %arg4[%c0_5, %c0_6] : memref<32x32xbf16, #tpu.memory_space<vmem>>, vector<32x32xbf16>
    %cst_7 = arith.constant dense<0.000000e+00> : vector<512x32xf32>
    %10 = tpu.matmul %8, %9, %cst_7 {dimension_numbers = #tpu.dot_dimension_numbers<[1], [0], [0], [1], [0, 0, 1, 1], [], []>} : vector<512x32xbf16>, vector<32x32xbf16>, vector<512x32xf32> -> vector<512x32xf32>
    %c0_8 = arith.constant 0 : index
    %c0_9 = arith.constant 0 : index
    %11 = vector.load %arg5[%c0_8, %c0_9] : memref<1x32xf32, #tpu.memory_space<vmem>>, vector<1x32xf32>
    %12 = vector.broadcast %11 : vector<1x32xf32> to vector<512x32xf32>
    %13 = arith.addf %10, %12 : vector<512x32xf32>
    %14 = math.tanh %13 : vector<512x32xf32>
    %15 = arith.truncf %14 : vector<512x32xf32> to vector<512x32xbf16>
    %c0_10 = arith.constant 0 : index
    %c0_11 = arith.constant 0 : index
    %16 = vector.load %arg6[%c0_10, %c0_11] : memref<32x8xbf16, #tpu.memory_space<vmem>>, vector<32x8xbf16>
    %cst_12 = arith.constant dense<0.000000e+00> : vector<512x8xf32>
    %17 = tpu.matmul %15, %16, %cst_12 {dimension_numbers = #tpu.dot_dimension_numbers<[1], [0], [0], [1], [0, 0, 1, 1], [], []>} : vector<512x32xbf16>, vector<32x8xbf16>, vector<512x8xf32> -> vector<512x8xf32>
    %c0_13 = arith.constant 0 : index
    %c0_14 = arith.constant 0 : index
    %18 = vector.load %arg7[%c0_13, %c0_14] : memref<512x8xf32, #tpu.memory_space<vmem>>, vector<512x8xf32>
    tpu.vector_store %arg7[%c0_13, %c0_14], %17 {strides = array<i32>} : memref<512x8xf32, #tpu.memory_space<vmem>>, vector<512x8xf32>,
    return
  }
  func.func @transform_0(%arg0: i32) -> (i32, i32) {
    %c0_i32 = arith.constant 0 : i32
    %c0_i32_0 = arith.constant 0 : i32
    return %arg0, %c0_i32 : i32, i32
  }
  func.func @transform_1(%arg0: i32) -> (i32, i32) {
    %c0_i32 = arith.constant 0 : i32
    %c0_i32_0 = arith.constant 0 : i32
    %c0_i32_1 = arith.constant 0 : i32
    return %c0_i32, %c0_i32_0 : i32, i32
  }
  func.func @transform_2(%arg0: i32) -> (i32, i32) {
    %c0_i32 = arith.constant 0 : i32
    %c0_i32_0 = arith.constant 0 : i32
    %c0_i32_1 = arith.constant 0 : i32
    return %c0_i32, %c0_i32_0 : i32, i32
  }
  func.func @transform_3(%arg0: i32) -> (i32, i32) {
    %c0_i32 = arith.constant 0 : i32
    %c0_i32_0 = arith.constant 0 : i32
    %c0_i32_1 = arith.constant 0 : i32
    return %c0_i32, %c0_i32_0 : i32, i32
  }
  func.func @transform_4(%arg0: i32) -> (i32, i32) {
    %c0_i32 = arith.constant 0 : i32
    %c0_i32_0 = arith.constant 0 : i32
    %c0_i32_1 = arith.constant 0 : i32
    return %c0_i32, %c0_i32_0 : i32, i32
  }
  func.func @transform_5(%arg0: i32) -> (i32, i32) {
    %c0_i32 = arith.constant 0 : i32
    %c0_i32_0 = arith.constant 0 : i32
    %c0_i32_1 = arith.constant 0 : i32
    return %c0_i32, %c0_i32_0 : i32, i32
  }
  func.func @transform_6(%arg0: i32) -> (i32, i32) {
    %c0_i32 = arith.constant 0 : i32
    %c0_i32_0 = arith.constant 0 : i32
    return %arg0, %c0_i32 : i32, i32
  }
}

</mosaic_0001>

<bundles_post_ra>
// kernel: differentiable_model_forward.1
= control target key start
LH: loop header
LB: loop body
LE: loop exit
PB: predicated region body
PF: predicated region fallthrough
CT: control target
= control target key end

     0   :  { %vm135_vm0 = vcmask 130048   ;;  %vm640_vm1 = vcmask 261120   ;;  %vm1523_vm2 = vcmask 64512   ;;  %s3062_s1 = inlined_call_operand.vmem [shape: bf16[16,32], index: 1, kind: input, shape index: {}]   ;;  %s3063_s0 = inlined_call_operand.vmem [shape: f32[512,16], index: 0, kind: input, shape index: {}]   ;;  %s3064_s3 = inlined_call_operand.vmem [shape: bf16[32,32], index: 3, kind: input, shape index: {}]   ;;  %s3065_s2 = inlined_call_operand.vmem [shape: f32[1,32], index: 2, kind: input, shape index: {}]   ;;  %s3066_s5 = inlined_call_operand.vmem [shape: bf16[32,8], index: 5, kind: input, shape index: {}]   ;;  %s3067_s4 = inlined_call_operand.vmem [shape: f32[1,32], index: 4, kind: input, shape index: {}]   ;;  %s3068_s6 = inlined_call_operand.vmem [shape: f32[512,8], index: 6, kind: output, shape index: {}]  }
   0x1   :  { %v2000_v0 = vld [vmem:[%s3062_s1] sm:$0xff]   ;;  %v25_v2 = vld [vmem:[%s3063_s0 + $0x8] sm:$0xff]  ;;  %v26_v3 = vld [vmem:[%s3063_s0 + $0x10] sm:$0xff] }
   0x2   :  { %v24_v1 = vld [vmem:[%s3063_s0] sm:$0xff]  ;;  %1796 = vmatprep.subr.bf16.mxu0 %v2000_v0  ;;  %v27_v5 = vld [vmem:[%s3063_s0 + $0x18] sm:$0xff]  ;;  %v29_v7 = vld [vmem:[%s3063_s0 + $0x28] sm:$0xff]  ;;  %1998 = vmatprep.subr.bf16.mxu1 %v2000_v0 }
   0x3   :  { %v88_v4 = vpack.c.bf16 %v25_v2, %v24_v1  ;;  %v28_v6 = vld [vmem:[%s3063_s0 + $0x20] sm:$0xff]  ;;  %1797 = vmatpush3.bf16.msra.mxu0 %v2000_v0  ;;  %v89_v8 = vpack.c.bf16 %v27_v5, %v26_v3  ;;  %1999 = vmatpush3.bf16.msra.mxu1 %v2000_v0  ;;  %v30_v10 = vld [vmem:[%s3063_s0 + $0x30] sm:$0xff]  ;;  %v31_v11 = vld [vmem:[%s3063_s0 + $0x38] sm:$0xff] }
   0x4   :  { %v90_v9 = vpack.c.bf16 %v29_v7, %v28_v6  ;;  %v32_v12 = vld [vmem:[%s3063_s0 + $0x40] sm:$0xff]  ;;  %v33_v13 = vld [vmem:[%s3063_s0 + $0x48] sm:$0xff]  ;;  %v91_v14 = vpack.c.bf16 %v31_v11, %v30_v10  ;;  %v58_v18 = vld [vmem:[%s3063_s0 + $0x110] sm:$0xff] }
   0x5   :  { %1798 = vmatprep.mubr.msk.bf16.mxu0 %vm135_vm0, %v88_v4  ;;  %v92_v15 = vpack.c.bf16 %v33_v13, %v32_v12  ;;  %v56_v16 = vld [vmem:[%s3063_s0 + $0x100] sm:$0xff]  ;;  %v57_v17 = vld [vmem:[%s3063_s0 + $0x108] sm:$0xff]  ;;  %v59_v19 = vld [vmem:[%s3063_s0 + $0x118] sm:$0xff] }
   0x6   :  { %1799 = vmatmul.mubr.msk.bf16.vlgmr.msra.gmra.mxu0 %vm135_vm0, %v89_v8  ;;  %v104_v20 = vpack.c.bf16 %v57_v17, %v56_v16  ;;  %v105_v21 = vpack.c.bf16 %v59_v19, %v58_v18  ;;  %v60_v22 = vld [vmem:[%s3063_s0 + $0x120] sm:$0xff]  ;;  %v61_v23 = vld [vmem:[%s3063_s0 + $0x128] sm:$0xff]  ;;  %v34_v25 = vld [vmem:[%s3063_s0 + $0x50] sm:$0xff] }
   0x7   :  { %1802 = vmatprep.mubr.msk.bf16.mxu0 %vm135_vm0, %v90_v9  ;;  %v106_v24 = vpack.c.bf16 %v61_v23, %v60_v22  ;;  %v35_v26 = vld [vmem:[%s3063_s0 + $0x58] sm:$0xff]  ;;  %v36_v27 = vld [vmem:[%s3063_s0 + $0x60] sm:$0xff]  ;;  %v37_v28 = vld [vmem:[%s3063_s0 + $0x68] sm:$0xff] }
   0x8   :  { %1830 = vmatprep.mubr.msk.bf16.mxu1 %vm135_vm0, %v104_v20  ;;  %v62_v29 = vld [vmem:[%s3063_s0 + $0x130] sm:$0xff]  ;;  %v63_v30 = vld [vmem:[%s3063_s0 + $0x138] sm:$0xff]  ;;  %v93_v31 = vpack.c.bf16 %v35_v26, %v34_v25  ;;  %v64_v32 = vld [vmem:[%s3063_s0 + $0x140] sm:$0xff]  ;;  %v94_v34 = vpack.c.bf16 %v37_v28, %v36_v27 }
   0x9   :  { %1831 = vmatmul.mubr.msk.bf16.vlgmr.msra.gmra.mxu1 %vm135_vm0, %v105_v21  ;;  %v65_v33 = vld [vmem:[%s3063_s0 + $0x148] sm:$0xff]  ;;  %v107_v35 = vpack.c.bf16 %v63_v30, %v62_v29  ;;  %v38_v36 = vld [vmem:[%s3063_s0 + $0x70] sm:$0xff]  ;;  %v39_v38 = vld [vmem:[%s3063_s0 + $0x78] sm:$0xff] }
   0xa   :  { %1834 = vmatprep.mubr.msk.bf16.mxu1 %vm135_vm0, %v106_v24  ;;  %v108_v37 = vpack.c.bf16 %v65_v33, %v64_v32  ;;  %v2001_v39 = vld [vmem:[%s3064_s3 + $0x8] sm:$0xff]   ;;  %v40_v40 = vld [vmem:[%s3063_s0 + $0x80] sm:$0xff]  ;;  %v66_v43 = vld [vmem:[%s3063_s0 + $0x150] sm:$0xff]  ;;  %v95_v45 = vpack.c.bf16 %v39_v38, %v38_v36 }
   0xb   :  { %v41_v41 = vld [vmem:[%s3063_s0 + $0x88] sm:$0xff]  ;;  %v2002_v42 = vld [vmem:[%s3064_s3] sm:$0xff]   ;;  %v67_v44 = vld [vmem:[%s3063_s0 + $0x158] sm:$0xff]  ;;  %1862 = vmatprep.subr.bf16.mxu1 %v2001_v39 }
   0xc   :  { %v68_v46 = vld [vmem:[%s3063_s0 + $0x160] sm:$0xff]  ;;  %v69_v47 = vld [vmem:[%s3063_s0 + $0x168] sm:$0xff]  ;;  %1863 = vmatpush3.bf16.msra.mxu1 %v2001_v39  ;;  %v96_v48 = vpack.c.bf16 %v41_v41, %v40_v40  ;;  %v109_v49 = vpack.c.bf16 %v67_v44, %v66_v43  ;;  %v42_v51 = vld [vmem:[%s3063_s0 + $0x90] sm:$0xff] }
   0xd   :  { %1864 = vmatprep.subr.bf16.mxu1 %v2002_v42  ;;  %v110_v50 = vpack.c.bf16 %v69_v47, %v68_v46  ;;  %v43_v52 = vld [vmem:[%s3063_s0 + $0x98] sm:$0xff]  ;;  %v44_v53 = vld [vmem:[%s3063_s0 + $0xa0] sm:$0xff]  ;;  %v45_v54 = vld [vmem:[%s3063_s0 + $0xa8] sm:$0xff] }
   0xe   :  { %1803 = vmatmul.mubr.msk.bf16.gmra.mxu0 %vm135_vm0, %v91_v14  ;;  %v70_v55 = vld [vmem:[%s3063_s0 + $0x170] sm:$0xff]  ;;  %v71_v56 = vld [vmem:[%s3063_s0 + $0x178] sm:$0xff]  ;;  %v97_v57 = vpack.c.bf16 %v43_v52, %v42_v51  ;;  %v72_v58 = vld [vmem:[%s3063_s0 + $0x180] sm:$0xff]  ;;  %v98_v60 = vpack.c.bf16 %v45_v54, %v44_v53 }
   0xf   :  { %1806 = vmatprep.mubr.msk.bf16.mxu0 %vm135_vm0, %v92_v15  ;;  %v73_v59 = vld [vmem:[%s3063_s0 + $0x188] sm:$0xff]  ;;  %v111_v61 = vpack.c.bf16 %v71_v56, %v70_v55  ;;  %v46_v63 = vld [vmem:[%s3063_s0 + $0xb0] sm:$0xff]  ;;  %v47_v0 = vld [vmem:[%s3063_s0 + $0xb8] sm:$0xff] }
  0x10   :  { %1865 = vmatpush3.bf16.msra.mxu1 %v2002_v42  ;;  %v112_v62 = vpack.c.bf16 %v73_v59, %v72_v58  ;;  %v48_v1 = vld [vmem:[%s3063_s0 + $0xc0] sm:$0xff]  ;;  %v49_v2 = vld [vmem:[%s3063_s0 + $0xc8] sm:$0xff]  ;;  %v74_v3 = vld [vmem:[%s3063_s0 + $0x190] sm:$0xff]  ;;  %v99_v5 = vpack.c.bf16 %v47_v0, %v46_v63 }
  0x11   :  { %1835 = vmatmul.mubr.msk.bf16.gmra.mxu1 %vm135_vm0, %v107_v35  ;;  %v75_v4 = vld [vmem:[%s3063_s0 + $0x198] sm:$0xff]  ;;  %v76_v6 = vld [vmem:[%s3063_s0 + $0x1a0] sm:$0xff]  ;;  %v77_v7 = vld [vmem:[%s3063_s0 + $0x1a8] sm:$0xff]  ;;  %v100_v8 = vpack.c.bf16 %v49_v2, %v48_v1 }
  0x12   :  { %1838 = vmatprep.mubr.msk.bf16.mxu1 %vm135_vm0, %v108_v37  ;;  %v113_v9 = vpack.c.bf16 %v75_v4, %v74_v3  ;;  %v114_v10 = vpack.c.bf16 %v77_v7, %v76_v6  ;;  %v50_v11 = vld [vmem:[%s3063_s0 + $0xd0] sm:$0xff]  ;;  %v51_v12 = vld [vmem:[%s3063_s0 + $0xd8] sm:$0xff]  ;;  %v52_v13 = vld [vmem:[%s3063_s0 + $0xe0] sm:$0xff] }
  0x13   :  { %v53_v14 = vld [vmem:[%s3063_s0 + $0xe8] sm:$0xff]  ;;  %v78_v15 = vld [vmem:[%s3063_s0 + $0x1b0] sm:$0xff]  ;;  %v79_v16 = vld [vmem:[%s3063_s0 + $0x1b8] sm:$0xff]  ;;  %v101_v17 = vpack.c.bf16 %v51_v12, %v50_v11 }
  0x14   :  { %v80_v18 = vld [vmem:[%s3063_s0 + $0x1c0] sm:$0xff]  ;;  %v81_v19 = vld [vmem:[%s3063_s0 + $0x1c8] sm:$0xff]  ;;  %v102_v20 = vpack.c.bf16 %v53_v14, %v52_v13  ;;  %v115_v21 = vpack.c.bf16 %v79_v16, %v78_v15  ;;  %v54_v23 = vld [vmem:[%s3063_s0 + $0xf0] sm:$0xff] }
  0x15   :  { %v116_v22 = vpack.c.bf16 %v81_v19, %v80_v18  ;;  %v55_v24 = vld [vmem:[%s3063_s0 + $0xf8] sm:$0xff]  ;;  %v82_v25 = vld [vmem:[%s3063_s0 + $0x1d0] sm:$0xff]  ;;  %v84_v28 = vld [vmem:[%s3063_s0 + $0x1e0] sm:$0xff] }
  0x16   :  { %1807 = vmatmul.mubr.msk.bf16.gmra.mxu0 %vm135_vm0, %v93_v31  ;;  %v83_v26 = vld [vmem:[%s3063_s0 + $0x1d8] sm:$0xff]  ;;  %v103_v27 = vpack.c.bf16 %v55_v24, %v54_v23  ;;  %v85_v29 = vld [vmem:[%s3063_s0 + $0x1e8] sm:$0xff]  ;;  %v86_v32 = vld [vmem:[%s3063_s0 + $0x1f0] sm:$0xff] }
  0x17   :  { %1810 = vmatprep.mubr.msk.bf16.mxu0 %vm135_vm0, %v94_v34  ;;  %v117_v30 = vpack.c.bf16 %v83_v26, %v82_v25  ;;  %v118_v31 = vpack.c.bf16 %v85_v29, %v84_v28  ;;  %v87_v33 = vld [vmem:[%s3063_s0 + $0x1f8] sm:$0xff]  ;;  %v2532_v36 = vld [vmem:[%s3065_s2] ss:$0 sm:$0xff] }
  0x18   :  { %v119_v34 = vpack.c.bf16 %v87_v33, %v86_v32  ;;  %v2004_v0 = vld [vmem:[%s3066_s5] sm:$0xff]  }
  0x19   :  { %1839 = vmatmul.mubr.msk.bf16.gmra.mxu1 %vm135_vm0, %v109_v49 }
  0x1a   :  { %1842 = vmatprep.mubr.msk.bf16.mxu1 %vm135_vm0, %v110_v50 }
  0x1e   :  { %1811 = vmatmul.mubr.msk.bf16.gmra.mxu0 %vm135_vm0, %v95_v45 }
  0x1f   :  { %1814 = vmatprep.mubr.msk.bf16.mxu0 %vm135_vm0, %v96_v48 }
  0x21   :  { %1843 = vmatmul.mubr.msk.bf16.gmra.mxu1 %vm135_vm0, %v111_v61 }
  0x22   :  { %1846 = vmatprep.mubr.msk.bf16.mxu1 %vm135_vm0, %v112_v62 }
  0x26   :  { %1815 = vmatmul.mubr.msk.bf16.gmra.mxu0 %vm135_vm0, %v97_v57 }
  0x27   :  { %1818 = vmatprep.mubr.msk.bf16.mxu0 %vm135_vm0, %v98_v60  ;;  %v2003_v60 = vld [vmem:[%s3066_s5 + $0x8] sm:$0xff]  }
  0x28   :  { %1930 = vmatprep.subr.bf16.mxu0 %v2003_v60 }
  0x29   :  { %1847 = vmatmul.mubr.msk.bf16.gmra.mxu1 %vm135_vm0, %v113_v9  ;;  %1931 = vmatpush3.bf16.msra.mxu0 %v2003_v60 }
  0x2a   :  { %1850 = vmatprep.mubr.msk.bf16.mxu1 %vm135_vm0, %v114_v10  ;;  %1932 = vmatprep.subr.bf16.mxu0 %v2004_v0 }
  0x2d   :  { %1933 = vmatpush3.bf16.msra.mxu0 %v2004_v0 }
  0x2e   :  { %1819 = vmatmul.mubr.msk.bf16.gmra.mxu0 %vm135_vm0, %v99_v5 }
  0x2f   :  { %1822 = vmatprep.mubr.msk.bf16.mxu0 %vm135_vm0, %v100_v8 }
  0x31   :  { %1851 = vmatmul.mubr.msk.bf16.gmra.mxu1 %vm135_vm0, %v115_v21 }
  0x32   :  { %1854 = vmatprep.mubr.msk.bf16.mxu1 %vm135_vm0, %v116_v22 }
  0x36   :  { %1823 = vmatmul.mubr.msk.bf16.gmra.mxu0 %vm135_vm0, %v101_v17 }
  0x37   :  { %1826 = vmatprep.mubr.msk.bf16.mxu0 %vm135_vm0, %v102_v20 }
  0x39   :  { %1855 = vmatmul.mubr.msk.bf16.gmra.mxu1 %vm135_vm0, %v117_v30 }
  0x3a   :  { %1858 = vmatprep.mubr.msk.bf16.mxu1 %vm135_vm0, %v118_v31 }
  0x3e   :  { %1827 = vmatmul.mubr.msk.bf16.gmra.mxu0 %vm135_vm0, %v103_v27 }
  0x41   :  { %1859 = vmatmul.mubr.msk.bf16.gmra.mxu1 %vm135_vm0, %v119_v34 }
  0xc6   :  { %v1800_v35 = vpop.f32.mrf.mxu0 }
  0xc7   :  { %v275_v41 = vadd.f32 %v1800_v35, %v2532_v36 }
  0xc8   :  { %v266_v37 = vpop.f32.mrf.mxu0 }
  0xc9   :  { %v267_v38 = vadd.f32 %v2532_v36, %v266_v37  ;;  %v2538_v46 = vpop.f32.mrf.mxu1 }
  0xca   :  { %v1801_v39 = vpop.f32.mrf.mxu0 }
  0xcb   :  { %v278_v40 = vadd.f32 %v1801_v39, %v2532_v36  ;;  %2005 = vtanh.f32 %v267_v38  ;;  %v2541_v49 = vpop.f32.mrf.mxu1 }
  0xcc   :  { %v269_v42 = vpop.f32.mrf.mxu0 }
  0xcd   :  { %v270_v43 = vadd.f32 %v2532_v36, %v269_v42  ;;  %2007 = vtanh.f32 %v278_v40  ;;  %v2545_v53 = vpop.f32.mrf.mxu1 }
  0xce   :  { %v1804_v44 = vpop.f32.mrf.mxu0 }
  0xcf   :  { %2009 = vtanh.f32 %v270_v43  ;;  %v291_v51 = vadd.f32 %v1804_v44, %v2532_v36  ;;  %v2548_v56 = vpop.f32.mrf.mxu1 }
  0xd0   :  { %2011 = vtanh.f32 %v275_v41  ;;  %v282_v45 = vpop.f32.mrf.mxu0 }
  0xd1   :  { %v283_v47 = vadd.f32 %v2532_v36, %v282_v45  ;;  %v2550_v58 = vpop.f32.mrf.mxu1 }
  0xd2   :  { %v1805_v48 = vpop.f32.mrf.mxu0 }
  0xd3   :  { %v294_v50 = vadd.f32 %v1805_v48, %v2532_v36  ;;  %2013 = vtanh.f32 %v283_v47  ;;  %v2556_v63 = vpop.f32.mrf.mxu1 }
  0xd4   :  { %v285_v52 = vpop.f32.mrf.mxu0 }
  0xd5   :  { %v286_v54 = vadd.f32 %v2532_v36, %v285_v52  ;;  %2015 = vtanh.f32 %v294_v50  ;;  %v2563_v6 = vpop.f32.mrf.mxu1 }
  0xd6   :  { %v1808_v55 = vpop.f32.mrf.mxu0 }
  0xd7   :  { %2017 = vtanh.f32 %v286_v54  ;;  %v307_v4 = vadd.f32 %v1808_v55, %v2532_v36  ;;  %v2566_v12 = vpop.f32.mrf.mxu1 }
  0xd8   :  { %2019 = vtanh.f32 %v291_v51  ;;  %v298_v57 = vpop.f32.mrf.mxu0  ;;  %v2006_v61 = vpop.eup %2005 }
  0xd9   :  { %v299_v59 = vadd.f32 %v2532_v36, %v298_v57  ;;  %v2570_v14 = vpop.f32.mrf.mxu1 }
  0xda   :  { %v1809_v62 = vpop.f32.mrf.mxu0  ;;  %v2008_v1 = vpop.eup %2007 }
  0xdb   :  { %v310_v2 = vadd.f32 %v1809_v62, %v2532_v36  ;;  %2021 = vtanh.f32 %v299_v59  ;;  %v2573_v18 = vpop.f32.mrf.mxu1 }
  0xdc   :  { %v2010_v3 = vpop.eup %2009  ;;  %v301_v5 = vpop.f32.mrf.mxu0 }
  0xdd   :  { %v2012_v7 = vpop.eup %2011  ;;  %v302_v8 = vadd.f32 %v2532_v36, %v301_v5  ;;  %v585_v9 = vpack.c.bf16 %v2010_v3, %v2006_v61  ;;  %2023 = vtanh.f32 %v310_v2  ;;  %v2577_v24 = vpop.f32.mrf.mxu1 }
  0xde   :  { %v586_v10 = vpack.c.bf16 %v2008_v1, %v2012_v7  ;;  %v1812_v11 = vpop.f32.mrf.mxu0 }
  0xdf   :  { %2025 = vtanh.f32 %v302_v8  ;;  %1866 = vmatprep.mubr.msk.bf16.mxu1 %vm640_vm1, %v585_v9  ;;  %v323_v22 = vadd.f32 %v1812_v11, %v2532_v36  ;;  %v2580_v30 = vpop.f32.mrf.mxu1 }
  0xe0   :  { %2027 = vtanh.f32 %v307_v4  ;;  %v314_v13 = vpop.f32.mrf.mxu0  ;;  %1867 = vmatmul.mubr.msk.bf16.vlgmr.msra.gmra.mxu1 %vm640_vm1, %v586_v10  ;;  %v2014_v16 = vpop.eup %2013 }
  0xe1   :  { %v315_v15 = vadd.f32 %v2532_v36, %v314_v13  ;;  %v2585_v35 = vpop.f32.mrf.mxu1 }
  0xe2   :  { %v1813_v17 = vpop.f32.mrf.mxu0  ;;  %v2016_v19 = vpop.eup %2015 }
  0xe3   :  { %v326_v20 = vadd.f32 %v1813_v17, %v2532_v36  ;;  %2029 = vtanh.f32 %v315_v15  ;;  %v2590_v48 = vpop.f32.mrf.mxu1 }
  0xe4   :  { %v2018_v21 = vpop.eup %2017  ;;  %v317_v23 = vpop.f32.mrf.mxu0 }
  0xe5   :  { %v2020_v25 = vpop.eup %2019  ;;  %v318_v26 = vadd.f32 %v2532_v36, %v317_v23  ;;  %v587_v27 = vpack.c.bf16 %v2018_v21, %v2014_v16  ;;  %2031 = vtanh.f32 %v326_v20  ;;  %v2595_v55 = vpop.f32.mrf.mxu1 }
  0xe6   :  { %v1816_v28 = vpop.f32.mrf.mxu0  ;;  %v588_v29 = vpack.c.bf16 %v2016_v19, %v2020_v25 }
  0xe7   :  { %2033 = vtanh.f32 %v318_v26  ;;  %1870 = vmatprep.mubr.msk.bf16.mxu1 %vm640_vm1, %v587_v27  ;;  %v339_v40 = vadd.f32 %v1816_v28, %v2532_v36  ;;  %v2600_v5 = vpop.f32.mrf.mxu1  ;;  %v395_v27 = vadd.f32 %v2532_v36, %v2541_v49 }
  0xe8   :  { %2035 = vtanh.f32 %v323_v22  ;;  %v330_v31 = vpop.f32.mrf.mxu0  ;;  %1871 = vmatmul.mubr.msk.bf16.gmra.mxu1 %vm640_vm1, %v588_v29  ;;  %v2022_v33 = vpop.eup %2021  ;;  %v398_v29 = vadd.f32 %v2532_v36, %v2548_v56 }
  0xe9   :  { %v331_v32 = vadd.f32 %v2532_v36, %v330_v31  ;;  %v2605_v11 = vpop.f32.mrf.mxu1 }
  0xea   :  { %v1817_v34 = vpop.f32.mrf.mxu0  ;;  %v2024_v37 = vpop.eup %2023 }
  0xeb   :  { %v342_v38 = vadd.f32 %v1817_v34, %v2532_v36  ;;  %2037 = vtanh.f32 %v331_v32  ;;  %v2610_v26 = vpop.f32.mrf.mxu1 }
  0xec   :  { %v2026_v39 = vpop.eup %2025  ;;  %v333_v41 = vpop.f32.mrf.mxu0 }
  0xed   :  { %v2028_v42 = vpop.eup %2027  ;;  %v334_v43 = vadd.f32 %v2532_v36, %v333_v41  ;;  %v589_v44 = vpack.c.bf16 %v2026_v39, %v2022_v33  ;;  %2039 = vtanh.f32 %v342_v38  ;;  %v2619_v34 = vpop.f32.mrf.mxu1 }
  0xee   :  { %v1820_v45 = vpop.f32.mrf.mxu0  ;;  %v590_v47 = vpack.c.bf16 %v2024_v37, %v2028_v42 }
  0xef   :  { %2041 = vtanh.f32 %v334_v43  ;;  %1874 = vmatprep.mubr.msk.bf16.mxu1 %vm640_vm1, %v589_v44  ;;  %v355_v61 = vadd.f32 %v1820_v45, %v2532_v36  ;;  %v2624_v44 = vpop.f32.mrf.mxu1  ;;  %v403_v45 = vadd.f32 %v2538_v46, %v2532_v36 }
  0xf0   :  { %2043 = vtanh.f32 %v339_v40  ;;  %v346_v50 = vpop.f32.mrf.mxu0  ;;  %1875 = vmatmul.mubr.msk.bf16.gmra.mxu1 %vm640_vm1, %v590_v47  ;;  %v2030_v52 = vpop.eup %2029  ;;  %v411_v47 = vadd.f32 %v2532_v36, %v2556_v63  ;;  %v419_v63 = vadd.f32 %v2550_v58, %v2532_v36 }
  0xf1   :  { %v347_v51 = vadd.f32 %v2532_v36, %v346_v50  ;;  %v414_v50 = vadd.f32 %v2532_v36, %v2566_v12 }
  0xf2   :  { %v1821_v54 = vpop.f32.mrf.mxu0  ;;  %v2032_v57 = vpop.eup %2031 }
  0xf3   :  { %v358_v59 = vadd.f32 %v1821_v54, %v2532_v36  ;;  %2045 = vtanh.f32 %v347_v51  ;;  %v2636_v54 = vpop.f32.mrf.mxu1 }
  0xf4   :  { %v2034_v60 = vpop.eup %2033  ;;  %v349_v62 = vpop.f32.mrf.mxu0 }
  0xf5   :  { %v2036_v0 = vpop.eup %2035  ;;  %v350_v1 = vadd.f32 %v2532_v36, %v349_v62  ;;  %v591_v2 = vpack.c.bf16 %v2034_v60, %v2030_v52  ;;  %2047 = vtanh.f32 %v358_v59  ;;  %v406_v52 = vadd.f32 %v2545_v53, %v2532_v36  ;;  %v474_v62 = vpop.f32.mrf.mxu1 }
  0xf6   :  { %v1824_v3 = vpop.f32.mrf.mxu0  ;;  %v592_v4 = vpack.c.bf16 %v2032_v57, %v2036_v0  ;;  %v427_v53 = vadd.f32 %v2532_v36, %v2573_v18 }
  0xf7   :  { %2049 = vtanh.f32 %v350_v1  ;;  %1878 = vmatprep.mubr.msk.bf16.mxu1 %vm640_vm1, %v591_v2  ;;  %v371_v17 = vadd.f32 %v1824_v3, %v2532_v36  ;;  %v430_v1 = vadd.f32 %v2532_v36, %v2580_v30  ;;  %v422_v3 = vadd.f32 %v2563_v6, %v2532_v36 }
  0xf8   :  { %2051 = vtanh.f32 %v355_v61  ;;  %v362_v7 = vpop.f32.mrf.mxu0  ;;  %1879 = vmatmul.mubr.msk.bf16.gmra.mxu1 %vm640_vm1, %v592_v4  ;;  %v2038_v9 = vpop.eup %2037  ;;  %v435_v30 = vadd.f32 %v2570_v14, %v2532_v36  ;;  %v443_v6 = vadd.f32 %v2532_v36, %v2590_v48 }
  0xf9   :  { %v363_v8 = vadd.f32 %v2532_v36, %v362_v7  ;;  %v2648_v4 = vpop.f32.mrf.mxu1 }
  0xfa   :  { %v1825_v10 = vpop.f32.mrf.mxu0  ;;  %v2040_v13 = vpop.eup %2039 }
  0xfb   :  { %v374_v15 = vadd.f32 %v1825_v10, %v2532_v36  ;;  %2053 = vtanh.f32 %v363_v8 }
  0xfc   :  { %v2042_v16 = vpop.eup %2041  ;;  %v365_v19 = vpop.f32.mrf.mxu0 }
  0xfd   :  { %v2044_v20 = vpop.eup %2043  ;;  %v366_v21 = vadd.f32 %v2532_v36, %v365_v19  ;;  %v593_v22 = vpack.c.bf16 %v2042_v16, %v2038_v9  ;;  %2055 = vtanh.f32 %v374_v15 }
  0xfe   :  { %v1828_v23 = vpop.f32.mrf.mxu0  ;;  %v594_v25 = vpack.c.bf16 %v2040_v13, %v2044_v20  ;;  %v477_v13 = vpop.f32.mrf.mxu1  ;;  %v438_v20 = vadd.f32 %v2577_v24, %v2532_v36 }
  0xff   :  { %2057 = vtanh.f32 %v366_v21  ;;  %1882 = vmatprep.mubr.msk.bf16.mxu1 %vm640_vm1, %v593_v22  ;;  %v387_v49 = vadd.f32 %v1828_v23, %v2532_v36 }
 0x100   :  { %2059 = vtanh.f32 %v371_v17  ;;  %v378_v28 = vpop.f32.mrf.mxu0  ;;  %1883 = vmatmul.mubr.msk.bf16.gmra.mxu1 %vm640_vm1, %v594_v25  ;;  %v2046_v32 = vpop.eup %2045  ;;  %v446_v17 = vadd.f32 %v2532_v36, %v2600_v5  ;;  %v451_v25 = vadd.f32 %v2585_v35, %v2532_v36  ;;  %v459_v5 = vadd.f32 %v2532_v36, %v2610_v26 }
 0x101   :  { %v379_v31 = vadd.f32 %v2532_v36, %v378_v28  ;;  %2061 = vtanh.f32 %v395_v27  ;;  %v2661_v21 = vpop.f32.mrf.mxu1  ;;  %v462_v28 = vadd.f32 %v2532_v36, %v2624_v44  ;;  %v467_v26 = vadd.f32 %v2605_v11, %v2532_v36 }
 0x102   :  { %v1829_v33 = vpop.f32.mrf.mxu0  ;;  %v2048_v37 = vpop.eup %2047  ;;  %2063 = vtanh.f32 %v398_v29 }
 0x103   :  { %v390_v38 = vadd.f32 %v1829_v33, %v2532_v36  ;;  %2065 = vtanh.f32 %v379_v31  ;;  %v490_v48 = vpop.f32.mrf.mxu1  ;;  %v454_v31 = vadd.f32 %v2595_v55, %v2532_v36  ;;  %v478_v55 = vadd.f32 %v2532_v36, %v477_v13 }
 0x104   :  { %v2050_v39 = vpop.eup %2049  ;;  %v381_v40 = vpop.f32.mrf.mxu0 }
 0x105   :  { %v2052_v41 = vpop.eup %2051  ;;  %v382_v42 = vadd.f32 %v2532_v36, %v381_v40  ;;  %v595_v56 = vpack.c.bf16 %v2050_v39, %v2046_v32  ;;  %2067 = vtanh.f32 %v390_v38  ;;  %v1857_v32 = vpop.f32.mrf.mxu1 }
 0x106   :  { %v596_v43 = vpack.c.bf16 %v2048_v37, %v2052_v41 }
 0x107   :  { %2069 = vtanh.f32 %v382_v42  ;;  %1886 = vmatprep.mubr.msk.bf16.mxu1 %vm640_vm1, %v595_v56  ;;  %v493_v38 = vpop.f32.mrf.mxu1  ;;  %v470_v42 = vadd.f32 %v2619_v34, %v2532_v36 }
 0x108   :  { %2071 = vtanh.f32 %v387_v49  ;;  %1887 = vmatmul.mubr.msk.bf16.gmra.mxu1 %vm640_vm1, %v596_v43  ;;  %v2054_v51 = vpop.eup %2053  ;;  %v475_v49 = vadd.f32 %v2532_v36, %v474_v62  ;;  %v494_v34 = vadd.f32 %v2532_v36, %v493_v38 }
 0x109   :  { %2073 = vtanh.f32 %v403_v45  ;;  %v1860_v56 = vpop.f32.mrf.mxu1 }
 0x10a   :  { %v2056_v57 = vpop.eup %2055  ;;  %2075 = vtanh.f32 %v411_v47  ;;  %v483_v47 = vadd.f32 %v2636_v54, %v2532_v36 }
 0x10b   :  { %2077 = vtanh.f32 %v414_v50  ;;  %v506_v45 = vpop.f32.mrf.mxu1 }
 0x10c   :  { %v2058_v46 = vpop.eup %2057  ;;  %2079 = vtanh.f32 %v406_v52 }
 0x10d   :  { %v2060_v59 = vpop.eup %2059  ;;  %v597_v60 = vpack.c.bf16 %v2058_v46, %v2054_v51  ;;  %2081 = vtanh.f32 %v419_v63  ;;  %v491_v51 = vadd.f32 %v2532_v36, %v490_v48  ;;  %v486_v46 = vadd.f32 %v2648_v4, %v2532_v36 }
 0x10e   :  { %v598_v61 = vpack.c.bf16 %v2056_v57, %v2060_v59  ;;  %v2062_v12 = vpop.eup %2061  ;;  %2083 = vtanh.f32 %v427_v53  ;;  %v1861_v59 = vpop.f32.mrf.mxu1  ;;  %v499_v63 = vadd.f32 %v2661_v21, %v2532_v36  ;;  %v507_v53 = vadd.f32 %v2532_v36, %v506_v45 }
 0x10f   :  { %1890 = vmatprep.mubr.msk.bf16.mxu1 %vm640_vm1, %v597_v60  ;;  %v2064_v0 = vpop.eup %2063  ;;  %2085 = vtanh.f32 %v430_v1  ;;  %v518_v13 = vadd.f32 %v1861_v59, %v2532_v36 }
 0x110   :  { %1891 = vmatmul.mubr.msk.bf16.gmra.mxu1 %vm640_vm1, %v598_v61  ;;  %v2066_v2 = vpop.eup %2065  ;;  %v601_v10 = vpack.c.bf16 %v2064_v0, %v2062_v12  ;;  %2087 = vtanh.f32 %v422_v3  ;;  %v509_v62 = vpop.f32.mrf.mxu1  ;;  %v502_v3 = vadd.f32 %v1857_v32, %v2532_v36 }
 0x111   :  { %2089 = vtanh.f32 %v435_v30  ;;  %v510_v1 = vadd.f32 %v2532_v36, %v509_v62 }
 0x112   :  { %v2068_v7 = vpop.eup %2067  ;;  %2091 = vtanh.f32 %v443_v6 }
 0x113   :  { %2093 = vtanh.f32 %v446_v17 }
 0x114   :  { %v2070_v58 = vpop.eup %2069  ;;  %2095 = vtanh.f32 %v438_v20 }
 0x115   :  { %v2072_v8 = vpop.eup %2071  ;;  %v599_v9 = vpack.c.bf16 %v2070_v58, %v2066_v2  ;;  %2097 = vtanh.f32 %v451_v25  ;;  %v2708_v25 = vld [vmem:[%s3067_s4] ss:$0 sm:$0xff] }
 0x116   :  { %v600_v18 = vpack.c.bf16 %v2068_v7, %v2072_v8  ;;  %v2074_v15 = vpop.eup %2073  ;;  %2099 = vtanh.f32 %v459_v5 }
 0x117   :  { %1894 = vmatprep.mubr.msk.bf16.mxu1 %vm640_vm1, %v599_v9  ;;  %v2076_v16 = vpop.eup %2075  ;;  %2101 = vtanh.f32 %v462_v28 }
 0x118   :  { %1895 = vmatmul.mubr.msk.bf16.gmra.mxu1 %vm640_vm1, %v600_v18  ;;  %v2078_v19 = vpop.eup %2077  ;;  %2103 = vtanh.f32 %v454_v31 }
 0x119   :  { %1898 = vmatprep.mubr.msk.bf16.mxu1 %vm640_vm1, %v601_v10  ;;  %v2080_v14 = vpop.eup %2079  ;;  %v603_v22 = vpack.c.bf16 %v2078_v19, %v2076_v16  ;;  %2105 = vtanh.f32 %v467_v26  ;;  %v515_v10 = vadd.f32 %v1860_v56, %v2532_v36 }
 0x11a   :  { %v602_v23 = vpack.c.bf16 %v2080_v14, %v2074_v15  ;;  %v2082_v27 = vpop.eup %2081  ;;  %2107 = vtanh.f32 %v475_v49 }
 0x11b   :  { %v2084_v24 = vpop.eup %2083  ;;  %2109 = vtanh.f32 %v478_v55 }
 0x11c   :  { %v2086_v29 = vpop.eup %2085  ;;  %2111 = vtanh.f32 %v470_v42 }
 0x11d   :  { %v2088_v33 = vpop.eup %2087  ;;  %v605_v35 = vpack.c.bf16 %v2086_v29, %v2084_v24  ;;  %2113 = vtanh.f32 %v483_v47 }
 0x11e   :  { %v604_v37 = vpack.c.bf16 %v2088_v33, %v2082_v27  ;;  %v2090_v39 = vpop.eup %2089  ;;  %2115 = vtanh.f32 %v491_v51 }
 0x11f   :  { %v2092_v40 = vpop.eup %2091  ;;  %2117 = vtanh.f32 %v494_v34 }
 0x120   :  { %1899 = vmatmul.mubr.msk.bf16.gmra.mxu1 %vm640_vm1, %v602_v23  ;;  %v2094_v41 = vpop.eup %2093  ;;  %2119 = vtanh.f32 %v486_v46 }
 0x121   :  { %1902 = vmatprep.mubr.msk.bf16.mxu1 %vm640_vm1, %v603_v22  ;;  %v2096_v43 = vpop.eup %2095  ;;  %v607_v11 = vpack.c.bf16 %v2094_v41, %v2092_v40  ;;  %2121 = vtanh.f32 %v499_v63 }
 0x122   :  { %v606_v44 = vpack.c.bf16 %v2096_v43, %v2090_v39  ;;  %v2098_v50 = vpop.eup %2097  ;;  %2123 = vtanh.f32 %v507_v53 }
 0x123   :  { %v2100_v52 = vpop.eup %2099  ;;  %2125 = vtanh.f32 %v510_v1 }
 0x124   :  { %v2102_v57 = vpop.eup %2101  ;;  %2127 = vtanh.f32 %v502_v3 }
 0x125   :  { %v2104_v60 = vpop.eup %2103  ;;  %v609_v54 = vpack.c.bf16 %v2102_v57, %v2100_v52  ;;  %2129 = vtanh.f32 %v515_v10 }
 0x126   :  { %v608_v61 = vpack.c.bf16 %v2104_v60, %v2098_v50  ;;  %v2106_v12 = vpop.eup %2105  ;;  %2131 = vtanh.f32 %v518_v13 }
 0x127   :  { %v2108_v0 = vpop.eup %2107 }
 0x128   :  { %1903 = vmatmul.mubr.msk.bf16.gmra.mxu1 %vm640_vm1, %v604_v37  ;;  %v2110_v2 = vpop.eup %2109 }
 0x129   :  { %1906 = vmatprep.mubr.msk.bf16.mxu1 %vm640_vm1, %v605_v35  ;;  %v2112_v4 = vpop.eup %2111  ;;  %v611_v7 = vpack.c.bf16 %v2110_v2, %v2108_v0 }
 0x12a   :  { %v610_v58 = vpack.c.bf16 %v2112_v4, %v2106_v12  ;;  %v2114_v8 = vpop.eup %2113 }
 0x12b   :  { %v2116_v9 = vpop.eup %2115 }
 0x12c   :  { %v2118_v18 = vpop.eup %2117 }
 0x12d   :  { %v2120_v30 = vpop.eup %2119  ;;  %v613_v15 = vpack.c.bf16 %v2118_v18, %v2116_v9 }
 0x12e   :  { %v612_v6 = vpack.c.bf16 %v2120_v30, %v2114_v8  ;;  %v2122_v16 = vpop.eup %2121 }
 0x12f   :  { %v2124_v17 = vpop.eup %2123 }
 0x130   :  { %1907 = vmatmul.mubr.msk.bf16.gmra.mxu1 %vm640_vm1, %v606_v44  ;;  %v2126_v19 = vpop.eup %2125 }
 0x131   :  { %1910 = vmatprep.mubr.msk.bf16.mxu1 %vm640_vm1, %v607_v11  ;;  %v2128_v20 = vpop.eup %2127  ;;  %v615_v21 = vpack.c.bf16 %v2126_v19, %v2124_v17 }
 0x132   :  { %v614_v14 = vpack.c.bf16 %v2128_v20, %v2122_v16  ;;  %v2130_v36 = vpop.eup %2129 }
 0x133   :  { %v2132_v22 = vpop.eup %2131 }
 0x134   :  { %v616_v23 = vpack.c.bf16 %v2132_v22, %v2130_v36 }
 0x138   :  { %1911 = vmatmul.mubr.msk.bf16.gmra.mxu1 %vm640_vm1, %v608_v61 }
 0x139   :  { %1914 = vmatprep.mubr.msk.bf16.mxu1 %vm640_vm1, %v609_v54 }
 0x140   :  { %1915 = vmatmul.mubr.msk.bf16.gmra.mxu1 %vm640_vm1, %v610_v58 }
 0x141   :  { %1918 = vmatprep.mubr.msk.bf16.mxu1 %vm640_vm1, %v611_v7 }
 0x148   :  { %1919 = vmatmul.mubr.msk.bf16.gmra.mxu1 %vm640_vm1, %v612_v6 }
 0x149   :  { %1922 = vmatprep.mubr.msk.bf16.mxu1 %vm640_vm1, %v613_v15 }
 0x150   :  { %1923 = vmatmul.mubr.msk.bf16.gmra.mxu1 %vm640_vm1, %v614_v14 }
 0x151   :  { %1926 = vmatprep.mubr.msk.bf16.mxu1 %vm640_vm1, %v615_v21 }
 0x158   :  { %1927 = vmatmul.mubr.msk.bf16.gmra.mxu1 %vm640_vm1, %v616_v23 }
 0x1a0   :  { %v1868_v48 = vpop.f32.mrf.mxu1 }
 0x1a1   :  { %v780_v29 = vadd.f32 %v1868_v48, %v2708_v25 }
 0x1a2   :  { %v771_v27 = vpop.f32.mrf.mxu1 }
 0x1a3   :  { %v772_v5 = vadd.f32 %v2708_v25, %v771_v27 }
 0x1a4   :  { %v1869_v24 = vpop.f32.mrf.mxu1 }
 0x1a5   :  { %v783_v28 = vadd.f32 %v1869_v24, %v2708_v25  ;;  %2133 = vtanh.f32 %v772_v5 }
 0x1a6   :  { %v774_v31 = vpop.f32.mrf.mxu1 }
 0x1a7   :  { %v775_v32 = vadd.f32 %v2708_v25, %v774_v31  ;;  %2135 = vtanh.f32 %v783_v28 }
 0x1a8   :  { %v1872_v33 = vpop.f32.mrf.mxu1 }
 0x1a9   :  { %2137 = vtanh.f32 %v775_v32  ;;  %v796_v39 = vadd.f32 %v1872_v33, %v2708_v25 }
 0x1aa   :  { %2139 = vtanh.f32 %v780_v29  ;;  %v787_v35 = vpop.f32.mrf.mxu1 }
 0x1ab   :  { %v788_v37 = vadd.f32 %v2708_v25, %v787_v35 }
 0x1ac   :  { %v1873_v38 = vpop.f32.mrf.mxu1 }
 0x1ad   :  { %v799_v26 = vadd.f32 %v1873_v38, %v2708_v25  ;;  %2141 = vtanh.f32 %v788_v37 }
 0x1ae   :  { %v790_v49 = vpop.f32.mrf.mxu1 }
 0x1af   :  { %v791_v40 = vadd.f32 %v2708_v25, %v790_v49  ;;  %2143 = vtanh.f32 %v799_v26 }
 0x1b0   :  { %v1876_v55 = vpop.f32.mrf.mxu1 }
 0x1b1   :  { %2145 = vtanh.f32 %v791_v40  ;;  %v812_v47 = vadd.f32 %v1876_v55, %v2708_v25 }
 0x1b2   :  { %2147 = vtanh.f32 %v796_v39  ;;  %v803_v41 = vpop.f32.mrf.mxu1  ;;  %v2134_v56 = vpop.eup %2133 }
 0x1b3   :  { %v804_v42 = vadd.f32 %v2708_v25, %v803_v41 }
 0x1b4   :  { %v1877_v43 = vpop.f32.mrf.mxu1  ;;  %v2136_v11 = vpop.eup %2135 }
 0x1b5   :  { %v815_v44 = vadd.f32 %v1877_v43, %v2708_v25  ;;  %2149 = vtanh.f32 %v804_v42 }
 0x1b6   :  { %v2138_v45 = vpop.eup %2137  ;;  %v806_v50 = vpop.f32.mrf.mxu1 }
 0x1b7   :  { %v2140_v51 = vpop.eup %2139  ;;  %v807_v52 = vadd.f32 %v2708_v25, %v806_v50  ;;  %v1090_v34 = vpack.c.bf16 %v2138_v45, %v2134_v56  ;;  %2151 = vtanh.f32 %v815_v44 }
 0x1b8   :  { %v1091_v57 = vpack.c.bf16 %v2136_v11, %v2140_v51  ;;  %v1880_v46 = vpop.f32.mrf.mxu1 }
 0x1b9   :  { %2153 = vtanh.f32 %v807_v52  ;;  %1934 = vmatprep.mubr.msk.bf16.mxu0 %vm640_vm1, %v1090_v34  ;;  %v828_v53 = vadd.f32 %v1880_v46, %v2708_v25 }
 0x1ba   :  { %2155 = vtanh.f32 %v812_v47  ;;  %v819_v59 = vpop.f32.mrf.mxu1  ;;  %1935 = vmatmul.mubr.msk.bf16.vlgmr.msra.gmra.mxu0 %vm640_vm1, %v1091_v57  ;;  %v2142_v54 = vpop.eup %2141 }
 0x1bb   :  { %v820_v60 = vadd.f32 %v2708_v25, %v819_v59 }
 0x1bc   :  { %v1881_v61 = vpop.f32.mrf.mxu1  ;;  %v2144_v62 = vpop.eup %2143 }
 0x1bd   :  { %v831_v63 = vadd.f32 %v1881_v61, %v2708_v25  ;;  %2157 = vtanh.f32 %v820_v60 }
 0x1be   :  { %v2146_v12 = vpop.eup %2145  ;;  %v822_v0 = vpop.f32.mrf.mxu1 }
 0x1bf   :  { %v2148_v1 = vpop.eup %2147  ;;  %v823_v2 = vadd.f32 %v2708_v25, %v822_v0  ;;  %v1092_v3 = vpack.c.bf16 %v2146_v12, %v2142_v54  ;;  %2159 = vtanh.f32 %v831_v63 }
 0x1c0   :  { %v1884_v4 = vpop.f32.mrf.mxu1  ;;  %v1093_v7 = vpack.c.bf16 %v2144_v62, %v2148_v1 }
 0x1c1   :  { %2161 = vtanh.f32 %v823_v2  ;;  %1938 = vmatprep.mubr.msk.bf16.mxu0 %vm640_vm1, %v1092_v3  ;;  %v844_v15 = vadd.f32 %v1884_v4, %v2708_v25 }
 0x1c2   :  { %2163 = vtanh.f32 %v828_v53  ;;  %v835_v58 = vpop.f32.mrf.mxu1  ;;  %1939 = vmatmul.mubr.msk.bf16.gmra.mxu0 %vm640_vm1, %v1093_v7  ;;  %v2150_v9 = vpop.eup %2149 }
 0x1c3   :  { %v836_v8 = vadd.f32 %v2708_v25, %v835_v58 }
 0x1c4   :  { %v1885_v10 = vpop.f32.mrf.mxu1  ;;  %v2152_v18 = vpop.eup %2151 }
 0x1c5   :  { %v847_v13 = vadd.f32 %v1885_v10, %v2708_v25  ;;  %2165 = vtanh.f32 %v836_v8 }
 0x1c6   :  { %v2154_v30 = vpop.eup %2153  ;;  %v838_v6 = vpop.f32.mrf.mxu1 }
 0x1c7   :  { %v2156_v16 = vpop.eup %2155  ;;  %v839_v17 = vadd.f32 %v2708_v25, %v838_v6  ;;  %v1094_v19 = vpack.c.bf16 %v2154_v30, %v2150_v9  ;;  %2167 = vtanh.f32 %v847_v13 }
 0x1c8   :  { %v1888_v20 = vpop.f32.mrf.mxu1  ;;  %v1095_v21 = vpack.c.bf16 %v2152_v18, %v2156_v16 }
 0x1c9   :  { %2169 = vtanh.f32 %v839_v17  ;;  %1942 = vmatprep.mubr.msk.bf16.mxu0 %vm640_vm1, %v1094_v19  ;;  %v860_v24 = vadd.f32 %v1888_v20, %v2708_v25 }
 0x1ca   :  { %2171 = vtanh.f32 %v844_v15  ;;  %v851_v14 = vpop.f32.mrf.mxu1  ;;  %1943 = vmatmul.mubr.msk.bf16.gmra.mxu0 %vm640_vm1, %v1095_v21  ;;  %v2158_v22 = vpop.eup %2157 }
 0x1cb   :  { %v852_v36 = vadd.f32 %v2708_v25, %v851_v14 }
 0x1cc   :  { %v1889_v23 = vpop.f32.mrf.mxu1  ;;  %v2160_v48 = vpop.eup %2159 }
 0x1cd   :  { %v863_v27 = vadd.f32 %v1889_v23, %v2708_v25  ;;  %2173 = vtanh.f32 %v852_v36 }
 0x1ce   :  { %v2162_v5 = vpop.eup %2161  ;;  %v854_v28 = vpop.f32.mrf.mxu1 }
 0x1cf   :  { %v2164_v29 = vpop.eup %2163  ;;  %v855_v31 = vadd.f32 %v2708_v25, %v854_v28  ;;  %v1096_v32 = vpack.c.bf16 %v2162_v5, %v2158_v22  ;;  %2175 = vtanh.f32 %v863_v27 }
 0x1d0   :  { %v1892_v33 = vpop.f32.mrf.mxu1  ;;  %v1097_v35 = vpack.c.bf16 %v2160_v48, %v2164_v29 }
 0x1d1   :  { %2177 = vtanh.f32 %v855_v31  ;;  %1946 = vmatprep.mubr.msk.bf16.mxu0 %vm640_vm1, %v1096_v32  ;;  %v876_v41 = vadd.f32 %v1892_v33, %v2708_v25 }
 0x1d2   :  { %2179 = vtanh.f32 %v860_v24  ;;  %v867_v37 = vpop.f32.mrf.mxu1  ;;  %1947 = vmatmul.mubr.msk.bf16.gmra.mxu0 %vm640_vm1, %v1097_v35  ;;  %v2166_v26 = vpop.eup %2165 }
 0x1d3   :  { %v868_v38 = vadd.f32 %v2708_v25, %v867_v37 }
 0x1d4   :  { %v1893_v39 = vpop.f32.mrf.mxu1  ;;  %v2168_v49 = vpop.eup %2167 }
 0x1d5   :  { %v879_v40 = vadd.f32 %v1893_v39, %v2708_v25  ;;  %2181 = vtanh.f32 %v868_v38 }
 0x1d6   :  { %v2170_v55 = vpop.eup %2169  ;;  %v870_v42 = vpop.f32.mrf.mxu1 }
 0x1d7   :  { %v2172_v56 = vpop.eup %2171  ;;  %v871_v43 = vadd.f32 %v2708_v25, %v870_v42  ;;  %v1098_v11 = vpack.c.bf16 %v2170_v55, %v2166_v26  ;;  %2183 = vtanh.f32 %v879_v40 }
 0x1d8   :  { %v1896_v44 = vpop.f32.mrf.mxu1  ;;  %v1099_v45 = vpack.c.bf16 %v2168_v49, %v2172_v56 }
 0x1d9   :  { %2185 = vtanh.f32 %v871_v43  ;;  %1950 = vmatprep.mubr.msk.bf16.mxu0 %vm640_vm1, %v1098_v11  ;;  %v892_v59 = vadd.f32 %v1896_v44, %v2708_v25 }
 0x1da   :  { %2187 = vtanh.f32 %v876_v41  ;;  %v883_v47 = vpop.f32.mrf.mxu1  ;;  %1951 = vmatmul.mubr.msk.bf16.gmra.mxu0 %vm640_vm1, %v1099_v45  ;;  %v2174_v51 = vpop.eup %2173 }
 0x1db   :  { %v884_v50 = vadd.f32 %v2708_v25, %v883_v47 }
 0x1dc   :  { %v1897_v52 = vpop.f32.mrf.mxu1  ;;  %v2176_v34 = vpop.eup %2175 }
 0x1dd   :  { %v895_v57 = vadd.f32 %v1897_v52, %v2708_v25  ;;  %2189 = vtanh.f32 %v884_v50 }
 0x1de   :  { %v2178_v46 = vpop.eup %2177  ;;  %v886_v60 = vpop.f32.mrf.mxu1 }
 0x1df   :  { %v2180_v54 = vpop.eup %2179  ;;  %v887_v61 = vadd.f32 %v2708_v25, %v886_v60  ;;  %v1100_v62 = vpack.c.bf16 %v2178_v46, %v2174_v51  ;;  %2191 = vtanh.f32 %v895_v57 }
 0x1e0   :  { %v1900_v63 = vpop.f32.mrf.mxu1  ;;  %v1101_v12 = vpack.c.bf16 %v2176_v34, %v2180_v54 }
 0x1e1   :  { %2193 = vtanh.f32 %v887_v61  ;;  %1954 = vmatprep.mubr.msk.bf16.mxu0 %vm640_vm1, %v1100_v62  ;;  %v908_v58 = vadd.f32 %v1900_v63, %v2708_v25 }
 0x1e2   :  { %2195 = vtanh.f32 %v892_v59  ;;  %v899_v53 = vpop.f32.mrf.mxu1  ;;  %1955 = vmatmul.mubr.msk.bf16.gmra.mxu0 %vm640_vm1, %v1101_v12  ;;  %v2182_v1 = vpop.eup %2181 }
 0x1e3   :  { %v900_v0 = vadd.f32 %v2708_v25, %v899_v53 }
 0x1e4   :  { %v1901_v2 = vpop.f32.mrf.mxu1  ;;  %v2184_v3 = vpop.eup %2183 }
 0x1e5   :  { %v911_v4 = vadd.f32 %v1901_v2, %v2708_v25  ;;  %2197 = vtanh.f32 %v900_v0 }
 0x1e6   :  { %v2186_v7 = vpop.eup %2185  ;;  %v902_v8 = vpop.f32.mrf.mxu1 }
 0x1e7   :  { %v2188_v9 = vpop.eup %2187  ;;  %v903_v10 = vadd.f32 %v2708_v25, %v902_v8  ;;  %v1102_v18 = vpack.c.bf16 %v2186_v7, %v2182_v1  ;;  %2199 = vtanh.f32 %v911_v4 }
 0x1e8   :  { %v1904_v13 = vpop.f32.mrf.mxu1  ;;  %v1103_v30 = vpack.c.bf16 %v2184_v3, %v2188_v9 }
 0x1e9   :  { %2201 = vtanh.f32 %v903_v10  ;;  %1958 = vmatprep.mubr.msk.bf16.mxu0 %vm640_vm1, %v1102_v18  ;;  %v924_v14 = vadd.f32 %v1904_v13, %v2708_v25 }
 0x1ea   :  { %2203 = vtanh.f32 %v908_v58  ;;  %v915_v15 = vpop.f32.mrf.mxu1  ;;  %1959 = vmatmul.mubr.msk.bf16.gmra.mxu0 %vm640_vm1, %v1103_v30  ;;  %v2190_v16 = vpop.eup %2189 }
 0x1eb   :  { %v916_v6 = vadd.f32 %v2708_v25, %v915_v15 }
 0x1ec   :  { %v1905_v17 = vpop.f32.mrf.mxu1  ;;  %v2192_v19 = vpop.eup %2191 }
 0x1ed   :  { %v927_v20 = vadd.f32 %v1905_v17, %v2708_v25  ;;  %2205 = vtanh.f32 %v916_v6 }
 0x1ee   :  { %v2194_v21 = vpop.eup %2193  ;;  %v918_v36 = vpop.f32.mrf.mxu1 }
 0x1ef   :  { %v2196_v22 = vpop.eup %2195  ;;  %v919_v23 = vadd.f32 %v2708_v25, %v918_v36  ;;  %v1104_v48 = vpack.c.bf16 %v2194_v21, %v2190_v16  ;;  %2207 = vtanh.f32 %v927_v20 }
 0x1f0   :  { %v1908_v27 = vpop.f32.mrf.mxu1  ;;  %v1105_v5 = vpack.c.bf16 %v2192_v19, %v2196_v22 }
 0x1f1   :  { %2209 = vtanh.f32 %v919_v23  ;;  %1962 = vmatprep.mubr.msk.bf16.mxu0 %vm640_vm1, %v1104_v48  ;;  %v940_v37 = vadd.f32 %v1908_v27, %v2708_v25 }
 0x1f2   :  { %2211 = vtanh.f32 %v924_v14  ;;  %v931_v24 = vpop.f32.mrf.mxu1  ;;  %1963 = vmatmul.mubr.msk.bf16.gmra.mxu0 %vm640_vm1, %v1105_v5  ;;  %v2198_v29 = vpop.eup %2197 }
 0x1f3   :  { %v932_v28 = vadd.f32 %v2708_v25, %v931_v24 }
 0x1f4   :  { %v1909_v31 = vpop.f32.mrf.mxu1  ;;  %v2200_v32 = vpop.eup %2199 }
 0x1f5   :  { %v943_v33 = vadd.f32 %v1909_v31, %v2708_v25  ;;  %2213 = vtanh.f32 %v932_v28 }
 0x1f6   :  { %v2202_v35 = vpop.eup %2201  ;;  %v934_v38 = vpop.f32.mrf.mxu1 }
 0x1f7   :  { %v2204_v26 = vpop.eup %2203  ;;  %v935_v39 = vadd.f32 %v2708_v25, %v934_v38  ;;  %v1106_v49 = vpack.c.bf16 %v2202_v35, %v2198_v29  ;;  %2215 = vtanh.f32 %v943_v33 }
 0x1f8   :  { %v1912_v40 = vpop.f32.mrf.mxu1  ;;  %v1107_v55 = vpack.c.bf16 %v2200_v32, %v2204_v26 }
 0x1f9   :  { %2217 = vtanh.f32 %v935_v39  ;;  %1966 = vmatprep.mubr.msk.bf16.mxu0 %vm640_vm1, %v1106_v49  ;;  %v956_v47 = vadd.f32 %v1912_v40, %v2708_v25 }
 0x1fa   :  { %2219 = vtanh.f32 %v940_v37  ;;  %v947_v41 = vpop.f32.mrf.mxu1  ;;  %1967 = vmatmul.mubr.msk.bf16.gmra.mxu0 %vm640_vm1, %v1107_v55  ;;  %v2206_v56 = vpop.eup %2205 }
 0x1fb   :  { %v948_v42 = vadd.f32 %v2708_v25, %v947_v41 }
 0x1fc   :  { %v1913_v43 = vpop.f32.mrf.mxu1  ;;  %v2208_v11 = vpop.eup %2207 }
 0x1fd   :  { %v959_v44 = vadd.f32 %v1913_v43, %v2708_v25  ;;  %2221 = vtanh.f32 %v948_v42 }
 0x1fe   :  { %v2210_v45 = vpop.eup %2209  ;;  %v950_v50 = vpop.f32.mrf.mxu1 }
 0x1ff   :  { %v2212_v51 = vpop.eup %2211  ;;  %v951_v52 = vadd.f32 %v2708_v25, %v950_v50  ;;  %v1108_v34 = vpack.c.bf16 %v2210_v45, %v2206_v56  ;;  %2223 = vtanh.f32 %v959_v44 }
 0x200   :  { %v1916_v57 = vpop.f32.mrf.mxu1  ;;  %v1109_v46 = vpack.c.bf16 %v2208_v11, %v2212_v51 }
 0x201   :  { %2225 = vtanh.f32 %v951_v52  ;;  %1970 = vmatprep.mubr.msk.bf16.mxu0 %vm640_vm1, %v1108_v34  ;;  %v972_v53 = vadd.f32 %v1916_v57, %v2708_v25 }
 0x202   :  { %2227 = vtanh.f32 %v956_v47  ;;  %v963_v59 = vpop.f32.mrf.mxu1  ;;  %1971 = vmatmul.mubr.msk.bf16.gmra.mxu0 %vm640_vm1, %v1109_v46  ;;  %v2214_v54 = vpop.eup %2213 }
 0x203   :  { %v964_v60 = vadd.f32 %v2708_v25, %v963_v59 }
 0x204   :  { %v1917_v61 = vpop.f32.mrf.mxu1  ;;  %v2216_v62 = vpop.eup %2215 }
 0x205   :  { %v975_v63 = vadd.f32 %v1917_v61, %v2708_v25  ;;  %2229 = vtanh.f32 %v964_v60 }
 0x206   :  { %v2218_v12 = vpop.eup %2217  ;;  %v966_v0 = vpop.f32.mrf.mxu1 }
 0x207   :  { %v2220_v1 = vpop.eup %2219  ;;  %v967_v2 = vadd.f32 %v2708_v25, %v966_v0  ;;  %v1110_v3 = vpack.c.bf16 %v2218_v12, %v2214_v54  ;;  %2231 = vtanh.f32 %v975_v63 }
 0x208   :  { %v1920_v4 = vpop.f32.mrf.mxu1  ;;  %v1111_v7 = vpack.c.bf16 %v2216_v62, %v2220_v1 }
 0x209   :  { %2233 = vtanh.f32 %v967_v2  ;;  %1974 = vmatprep.mubr.msk.bf16.mxu0 %vm640_vm1, %v1110_v3  ;;  %v988_v15 = vadd.f32 %v1920_v4, %v2708_v25 }
 0x20a   :  { %2235 = vtanh.f32 %v972_v53  ;;  %v979_v58 = vpop.f32.mrf.mxu1  ;;  %1975 = vmatmul.mubr.msk.bf16.gmra.mxu0 %vm640_vm1, %v1111_v7  ;;  %v2222_v9 = vpop.eup %2221 }
 0x20b   :  { %v980_v8 = vadd.f32 %v2708_v25, %v979_v58 }
 0x20c   :  { %v1921_v10 = vpop.f32.mrf.mxu1  ;;  %v2224_v18 = vpop.eup %2223 }
 0x20d   :  { %v991_v13 = vadd.f32 %v1921_v10, %v2708_v25  ;;  %2237 = vtanh.f32 %v980_v8 }
 0x20e   :  { %v2226_v30 = vpop.eup %2225  ;;  %v982_v6 = vpop.f32.mrf.mxu1 }
 0x20f   :  { %v2228_v16 = vpop.eup %2227  ;;  %v983_v17 = vadd.f32 %v2708_v25, %v982_v6  ;;  %v1112_v19 = vpack.c.bf16 %v2226_v30, %v2222_v9  ;;  %2239 = vtanh.f32 %v991_v13 }
 0x210   :  { %v1924_v20 = vpop.f32.mrf.mxu1  ;;  %v1113_v21 = vpack.c.bf16 %v2224_v18, %v2228_v16 }
 0x211   :  { %2241 = vtanh.f32 %v983_v17  ;;  %1978 = vmatprep.mubr.msk.bf16.mxu0 %vm640_vm1, %v1112_v19  ;;  %v1004_v24 = vadd.f32 %v1924_v20, %v2708_v25 }
 0x212   :  { %2243 = vtanh.f32 %v988_v15  ;;  %v995_v14 = vpop.f32.mrf.mxu1  ;;  %1979 = vmatmul.mubr.msk.bf16.gmra.mxu0 %vm640_vm1, %v1113_v21  ;;  %v2230_v22 = vpop.eup %2229 }
 0x213   :  { %v996_v36 = vadd.f32 %v2708_v25, %v995_v14 }
 0x214   :  { %v1925_v23 = vpop.f32.mrf.mxu1  ;;  %v2232_v48 = vpop.eup %2231 }
 0x215   :  { %v1007_v27 = vadd.f32 %v1925_v23, %v2708_v25  ;;  %2245 = vtanh.f32 %v996_v36 }
 0x216   :  { %v2234_v5 = vpop.eup %2233  ;;  %v998_v28 = vpop.f32.mrf.mxu1 }
 0x217   :  { %v2236_v29 = vpop.eup %2235  ;;  %v999_v31 = vadd.f32 %v2708_v25, %v998_v28  ;;  %v1114_v32 = vpack.c.bf16 %v2234_v5, %v2230_v22  ;;  %2247 = vtanh.f32 %v1007_v27 }
 0x218   :  { %v1928_v33 = vpop.f32.mrf.mxu1  ;;  %v1115_v35 = vpack.c.bf16 %v2232_v48, %v2236_v29 }
 0x219   :  { %2249 = vtanh.f32 %v999_v31  ;;  %1982 = vmatprep.mubr.msk.bf16.mxu0 %vm640_vm1, %v1114_v32  ;;  %v1020_v41 = vadd.f32 %v1928_v33, %v2708_v25 }
 0x21a   :  { %2251 = vtanh.f32 %v1004_v24  ;;  %v1011_v37 = vpop.f32.mrf.mxu1  ;;  %1983 = vmatmul.mubr.msk.bf16.gmra.mxu0 %vm640_vm1, %v1115_v35  ;;  %v2238_v26 = vpop.eup %2237 }
 0x21b   :  { %v1012_v38 = vadd.f32 %v2708_v25, %v1011_v37 }
 0x21c   :  { %v1929_v39 = vpop.f32.mrf.mxu1  ;;  %v2240_v49 = vpop.eup %2239 }
 0x21d   :  { %v1023_v40 = vadd.f32 %v1929_v39, %v2708_v25  ;;  %2253 = vtanh.f32 %v1012_v38 }
 0x21e   :  { %v2242_v55 = vpop.eup %2241  ;;  %v1014_v42 = vpop.f32.mrf.mxu1 }
 0x21f   :  { %v2244_v56 = vpop.eup %2243  ;;  %v1015_v43 = vadd.f32 %v2708_v25, %v1014_v42  ;;  %v1116_v11 = vpack.c.bf16 %v2242_v55, %v2238_v26  ;;  %2255 = vtanh.f32 %v1023_v40 }
 0x220   :  { %v1117_v44 = vpack.c.bf16 %v2240_v49, %v2244_v56 }
 0x221   :  { %2257 = vtanh.f32 %v1015_v43  ;;  %1986 = vmatprep.mubr.msk.bf16.mxu0 %vm640_vm1, %v1116_v11 }
 0x222   :  { %2259 = vtanh.f32 %v1020_v41  ;;  %1987 = vmatmul.mubr.msk.bf16.gmra.mxu0 %vm640_vm1, %v1117_v44  ;;  %v2246_v45 = vpop.eup %2245 }
 0x224   :  { %v2248_v47 = vpop.eup %2247 }
 0x226   :  { %v2250_v50 = vpop.eup %2249 }
 0x227   :  { %v2252_v51 = vpop.eup %2251  ;;  %v1118_v52 = vpack.c.bf16 %v2250_v50, %v2246_v45 }
 0x228   :  { %v1119_v34 = vpack.c.bf16 %v2248_v47, %v2252_v51 }
 0x229   :  { %1990 = vmatprep.mubr.msk.bf16.mxu0 %vm640_vm1, %v1118_v52 }
 0x22a   :  { %1991 = vmatmul.mubr.msk.bf16.gmra.mxu0 %vm640_vm1, %v1119_v34  ;;  %v2254_v25 = vpop.eup %2253 }
 0x22c   :  { %v2256_v57 = vpop.eup %2255 }
 0x22e   :  { %v2258_v46 = vpop.eup %2257 }
 0x22f   :  { %v2260_v59 = vpop.eup %2259  ;;  %v1120_v60 = vpack.c.bf16 %v2258_v46, %v2254_v25 }
 0x230   :  { %v1121_v54 = vpack.c.bf16 %v2256_v57, %v2260_v59 }
 0x231   :  { %1994 = vmatprep.mubr.msk.bf16.mxu0 %vm640_vm1, %v1120_v60 }
 0x232   :  { %1995 = vmatmul.mubr.msk.bf16.gmra.mxu0 %vm640_vm1, %v1121_v54 }
 0x27a   :  { %v1936_v61 = vpop.f32.mrf.mxu0 }
 0x27b   :  { %1526 = vst.msk [vmem:[%s3068_s6 + $0x10] sm:$0xff] %vm1523_vm2, %v1936_v61 }
 0x27c   :  { %v1268_v62 = vpop.f32.mrf.mxu0 }
 0x27d   :  { %1524 = vst.msk [vmem:[%s3068_s6] sm:$0xff] %vm1523_vm2, %v1268_v62 }
 0x27e   :  { %v1937_v63 = vpop.f32.mrf.mxu0 }
 0x27f   :  { %1527 = vst.msk [vmem:[%s3068_s6 + $0x18] sm:$0xff] %vm1523_vm2, %v1937_v63 }
 0x280   :  { %v1271_v12 = vpop.f32.mrf.mxu0 }
 0x281   :  { %1525 = vst.msk [vmem:[%s3068_s6 + $0x8] sm:$0xff] %vm1523_vm2, %v1271_v12 }
 0x282   :  { %v1940_v53 = vpop.f32.mrf.mxu0 }
 0x283   :  { %1530 = vst.msk [vmem:[%s3068_s6 + $0x30] sm:$0xff] %vm1523_vm2, %v1940_v53 }
 0x284   :  { %v1284_v0 = vpop.f32.mrf.mxu0 }
 0x285   :  { %1528 = vst.msk [vmem:[%s3068_s6 + $0x20] sm:$0xff] %vm1523_vm2, %v1284_v0 }
 0x286   :  { %v1941_v1 = vpop.f32.mrf.mxu0 }
 0x287   :  { %1531 = vst.msk [vmem:[%s3068_s6 + $0x38] sm:$0xff] %vm1523_vm2, %v1941_v1 }
 0x288   :  { %v1287_v2 = vpop.f32.mrf.mxu0 }
 0x289   :  { %1529 = vst.msk [vmem:[%s3068_s6 + $0x28] sm:$0xff] %vm1523_vm2, %v1287_v2 }
 0x28a   :  { %v1944_v3 = vpop.f32.mrf.mxu0 }
 0x28b   :  { %1534 = vst.msk [vmem:[%s3068_s6 + $0x50] sm:$0xff] %vm1523_vm2, %v1944_v3 }
 0x28c   :  { %v1300_v4 = vpop.f32.mrf.mxu0 }
 0x28d   :  { %1532 = vst.msk [vmem:[%s3068_s6 + $0x40] sm:$0xff] %vm1523_vm2, %v1300_v4 }
 0x28e   :  { %v1945_v7 = vpop.f32.mrf.mxu0 }
 0x28f   :  { %1535 = vst.msk [vmem:[%s3068_s6 + $0x58] sm:$0xff] %vm1523_vm2, %v1945_v7 }
 0x290   :  { %v1303_v58 = vpop.f32.mrf.mxu0 }
 0x291   :  { %1533 = vst.msk [vmem:[%s3068_s6 + $0x48] sm:$0xff] %vm1523_vm2, %v1303_v58 }
 0x292   :  { %v1948_v8 = vpop.f32.mrf.mxu0 }
 0x293   :  { %1538 = vst.msk [vmem:[%s3068_s6 + $0x70] sm:$0xff] %vm1523_vm2, %v1948_v8 }
 0x294   :  { %v1316_v9 = vpop.f32.mrf.mxu0 }
 0x295   :  { %1536 = vst.msk [vmem:[%s3068_s6 + $0x60] sm:$0xff] %vm1523_vm2, %v1316_v9 }
 0x296   :  { %v1949_v10 = vpop.f32.mrf.mxu0 }
 0x297   :  { %1539 = vst.msk [vmem:[%s3068_s6 + $0x78] sm:$0xff] %vm1523_vm2, %v1949_v10 }
 0x298   :  { %v1319_v18 = vpop.f32.mrf.mxu0 }
 0x299   :  { %1537 = vst.msk [vmem:[%s3068_s6 + $0x68] sm:$0xff] %vm1523_vm2, %v1319_v18 }
 0x29a   :  { %v1952_v13 = vpop.f32.mrf.mxu0 }
 0x29b   :  { %1542 = vst.msk [vmem:[%s3068_s6 + $0x90] sm:$0xff] %vm1523_vm2, %v1952_v13 }
 0x29c   :  { %v1332_v30 = vpop.f32.mrf.mxu0 }
 0x29d   :  { %1540 = vst.msk [vmem:[%s3068_s6 + $0x80] sm:$0xff] %vm1523_vm2, %v1332_v30 }
 0x29e   :  { %v1953_v15 = vpop.f32.mrf.mxu0 }
 0x29f   :  { %1543 = vst.msk [vmem:[%s3068_s6 + $0x98] sm:$0xff] %vm1523_vm2, %v1953_v15 }
 0x2a0   :  { %v1335_v6 = vpop.f32.mrf.mxu0 }
 0x2a1   :  { %1541 = vst.msk [vmem:[%s3068_s6 + $0x88] sm:$0xff] %vm1523_vm2, %v1335_v6 }
 0x2a2   :  { %v1956_v16 = vpop.f32.mrf.mxu0 }
 0x2a3   :  { %1546 = vst.msk [vmem:[%s3068_s6 + $0xb0] sm:$0xff] %vm1523_vm2, %v1956_v16 }
 0x2a4   :  { %v1348_v17 = vpop.f32.mrf.mxu0 }
 0x2a5   :  { %1544 = vst.msk [vmem:[%s3068_s6 + $0xa0] sm:$0xff] %vm1523_vm2, %v1348_v17 }
 0x2a6   :  { %v1957_v19 = vpop.f32.mrf.mxu0 }
 0x2a7   :  { %1547 = vst.msk [vmem:[%s3068_s6 + $0xb8] sm:$0xff] %vm1523_vm2, %v1957_v19 }
 0x2a8   :  { %v1351_v20 = vpop.f32.mrf.mxu0 }
 0x2a9   :  { %1545 = vst.msk [vmem:[%s3068_s6 + $0xa8] sm:$0xff] %vm1523_vm2, %v1351_v20 }
 0x2aa   :  { %v1960_v21 = vpop.f32.mrf.mxu0 }
 0x2ab   :  { %1550 = vst.msk [vmem:[%s3068_s6 + $0xd0] sm:$0xff] %vm1523_vm2, %v1960_v21 }
 0x2ac   :  { %v1364_v14 = vpop.f32.mrf.mxu0 }
 0x2ad   :  { %1548 = vst.msk [vmem:[%s3068_s6 + $0xc0] sm:$0xff] %vm1523_vm2, %v1364_v14 }
 0x2ae   :  { %v1961_v36 = vpop.f32.mrf.mxu0 }
 0x2af   :  { %1551 = vst.msk [vmem:[%s3068_s6 + $0xd8] sm:$0xff] %vm1523_vm2, %v1961_v36 }
 0x2b0   :  { %v1367_v22 = vpop.f32.mrf.mxu0 }
 0x2b1   :  { %1549 = vst.msk [vmem:[%s3068_s6 + $0xc8] sm:$0xff] %vm1523_vm2, %v1367_v22 }
 0x2b2   :  { %v1964_v23 = vpop.f32.mrf.mxu0 }
 0x2b3   :  { %1554 = vst.msk [vmem:[%s3068_s6 + $0xf0] sm:$0xff] %vm1523_vm2, %v1964_v23 }
 0x2b4   :  { %v1380_v48 = vpop.f32.mrf.mxu0 }
 0x2b5   :  { %1552 = vst.msk [vmem:[%s3068_s6 + $0xe0] sm:$0xff] %vm1523_vm2, %v1380_v48 }
 0x2b6   :  { %v1965_v27 = vpop.f32.mrf.mxu0 }
 0x2b7   :  { %1555 = vst.msk [vmem:[%s3068_s6 + $0xf8] sm:$0xff] %vm1523_vm2, %v1965_v27 }
 0x2b8   :  { %v1383_v5 = vpop.f32.mrf.mxu0 }
 0x2b9   :  { %1553 = vst.msk [vmem:[%s3068_s6 + $0xe8] sm:$0xff] %vm1523_vm2, %v1383_v5 }
 0x2ba   :  { %v1968_v24 = vpop.f32.mrf.mxu0 }
 0x2bb   :  { %1558 = vst.msk [vmem:[%s3068_s6 + $0x110] sm:$0xff] %vm1523_vm2, %v1968_v24 }
 0x2bc   :  { %v1396_v28 = vpop.f32.mrf.mxu0 }
 0x2bd   :  { %1556 = vst.msk [vmem:[%s3068_s6 + $0x100] sm:$0xff] %vm1523_vm2, %v1396_v28 }
 0x2be   :  { %v1969_v29 = vpop.f32.mrf.mxu0 }
 0x2bf   :  { %1559 = vst.msk [vmem:[%s3068_s6 + $0x118] sm:$0xff] %vm1523_vm2, %v1969_v29 }
 0x2c0   :  { %v1399_v31 = vpop.f32.mrf.mxu0 }
 0x2c1   :  { %1557 = vst.msk [vmem:[%s3068_s6 + $0x108] sm:$0xff] %vm1523_vm2, %v1399_v31 }
 0x2c2   :  { %v1972_v32 = vpop.f32.mrf.mxu0 }
 0x2c3   :  { %1562 = vst.msk [vmem:[%s3068_s6 + $0x130] sm:$0xff] %vm1523_vm2, %v1972_v32 }
 0x2c4   :  { %v1412_v33 = vpop.f32.mrf.mxu0 }
 0x2c5   :  { %1560 = vst.msk [vmem:[%s3068_s6 + $0x120] sm:$0xff] %vm1523_vm2, %v1412_v33 }
 0x2c6   :  { %v1973_v35 = vpop.f32.mrf.mxu0 }
 0x2c7   :  { %1563 = vst.msk [vmem:[%s3068_s6 + $0x138] sm:$0xff] %vm1523_vm2, %v1973_v35 }
 0x2c8   :  { %v1415_v37 = vpop.f32.mrf.mxu0 }
 0x2c9   :  { %1561 = vst.msk [vmem:[%s3068_s6 + $0x128] sm:$0xff] %vm1523_vm2, %v1415_v37 }
 0x2ca   :  { %v1976_v38 = vpop.f32.mrf.mxu0 }
 0x2cb   :  { %1566 = vst.msk [vmem:[%s3068_s6 + $0x150] sm:$0xff] %vm1523_vm2, %v1976_v38 }
 0x2cc   :  { %v1428_v26 = vpop.f32.mrf.mxu0 }
 0x2cd   :  { %1564 = vst.msk [vmem:[%s3068_s6 + $0x140] sm:$0xff] %vm1523_vm2, %v1428_v26 }
 0x2ce   :  { %v1977_v39 = vpop.f32.mrf.mxu0 }
 0x2cf   :  { %1567 = vst.msk [vmem:[%s3068_s6 + $0x158] sm:$0xff] %vm1523_vm2, %v1977_v39 }
 0x2d0   :  { %v1431_v49 = vpop.f32.mrf.mxu0 }
 0x2d1   :  { %1565 = vst.msk [vmem:[%s3068_s6 + $0x148] sm:$0xff] %vm1523_vm2, %v1431_v49 }
 0x2d2   :  { %v1980_v40 = vpop.f32.mrf.mxu0 }
 0x2d3   :  { %1570 = vst.msk [vmem:[%s3068_s6 + $0x170] sm:$0xff] %vm1523_vm2, %v1980_v40 }
 0x2d4   :  { %v1444_v55 = vpop.f32.mrf.mxu0 }
 0x2d5   :  { %1568 = vst.msk [vmem:[%s3068_s6 + $0x160] sm:$0xff] %vm1523_vm2, %v1444_v55 }
 0x2d6   :  { %v1981_v41 = vpop.f32.mrf.mxu0 }
 0x2d7   :  { %1571 = vst.msk [vmem:[%s3068_s6 + $0x178] sm:$0xff] %vm1523_vm2, %v1981_v41 }
 0x2d8   :  { %v1447_v42 = vpop.f32.mrf.mxu0 }
 0x2d9   :  { %1569 = vst.msk [vmem:[%s3068_s6 + $0x168] sm:$0xff] %vm1523_vm2, %v1447_v42 }
 0x2da   :  { %v1984_v56 = vpop.f32.mrf.mxu0 }
 0x2db   :  { %1574 = vst.msk [vmem:[%s3068_s6 + $0x190] sm:$0xff] %vm1523_vm2, %v1984_v56 }
 0x2dc   :  { %v1460_v43 = vpop.f32.mrf.mxu0 }
 0x2dd   :  { %1572 = vst.msk [vmem:[%s3068_s6 + $0x180] sm:$0xff] %vm1523_vm2, %v1460_v43 }
 0x2de   :  { %v1985_v11 = vpop.f32.mrf.mxu0 }
 0x2df   :  { %1575 = vst.msk [vmem:[%s3068_s6 + $0x198] sm:$0xff] %vm1523_vm2, %v1985_v11 }
 0x2e0   :  { %v1463_v44 = vpop.f32.mrf.mxu0 }
 0x2e1   :  { %1573 = vst.msk [vmem:[%s3068_s6 + $0x188] sm:$0xff] %vm1523_vm2, %v1463_v44 }
 0x2e2   :  { %v1988_v45 = vpop.f32.mrf.mxu0 }
 0x2e3   :  { %1578 = vst.msk [vmem:[%s3068_s6 + $0x1b0] sm:$0xff] %vm1523_vm2, %v1988_v45 }
 0x2e4   :  { %v1476_v47 = vpop.f32.mrf.mxu0 }
 0x2e5   :  { %1576 = vst.msk [vmem:[%s3068_s6 + $0x1a0] sm:$0xff] %vm1523_vm2, %v1476_v47 }
 0x2e6   :  { %v1989_v50 = vpop.f32.mrf.mxu0 }
 0x2e7   :  { %1579 = vst.msk [vmem:[%s3068_s6 + $0x1b8] sm:$0xff] %vm1523_vm2, %v1989_v50 }
 0x2e8   :  { %v1479_v51 = vpop.f32.mrf.mxu0 }
 0x2e9   :  { %1577 = vst.msk [vmem:[%s3068_s6 + $0x1a8] sm:$0xff] %vm1523_vm2, %v1479_v51 }
 0x2ea   :  { %v1992_v52 = vpop.f32.mrf.mxu0 }
 0x2eb   :  { %1582 = vst.msk [vmem:[%s3068_s6 + $0x1d0] sm:$0xff] %vm1523_vm2, %v1992_v52 }
 0x2ec   :  { %v1492_v34 = vpop.f32.mrf.mxu0 }
 0x2ed   :  { %1580 = vst.msk [vmem:[%s3068_s6 + $0x1c0] sm:$0xff] %vm1523_vm2, %v1492_v34 }
 0x2ee   :  { %v1993_v25 = vpop.f32.mrf.mxu0 }
 0x2ef   :  { %1583 = vst.msk [vmem:[%s3068_s6 + $0x1d8] sm:$0xff] %vm1523_vm2, %v1993_v25 }
 0x2f0   :  { %v1495_v57 = vpop.f32.mrf.mxu0 }
 0x2f1   :  { %1581 = vst.msk [vmem:[%s3068_s6 + $0x1c8] sm:$0xff] %vm1523_vm2, %v1495_v57 }
 0x2f2   :  { %v1996_v46 = vpop.f32.mrf.mxu0 }
 0x2f3   :  { %1586 = vst.msk [vmem:[%s3068_s6 + $0x1f0] sm:$0xff] %vm1523_vm2, %v1996_v46 }
 0x2f4   :  { %v1508_v59 = vpop.f32.mrf.mxu0 }
 0x2f5   :  { %1584 = vst.msk [vmem:[%s3068_s6 + $0x1e0] sm:$0xff] %vm1523_vm2, %v1508_v59 }
 0x2f6   :  { %v1997_v60 = vpop.f32.mrf.mxu0 }
 0x2f7   :  { %1587 = vst.msk [vmem:[%s3068_s6 + $0x1f8] sm:$0xff] %vm1523_vm2, %v1997_v60 }
 0x2f8   :  { %v1511_v54 = vpop.f32.mrf.mxu0 }
 0x2f9   :  { %1585 = vst.msk [vmem:[%s3068_s6 + $0x1e8] sm:$0xff] %vm1523_vm2, %v1511_v54 }

</bundles_post_ra>
